<compile_context>
chip_gen: v6e
topology: v6e:2x2x1
jax: 0.10.0
libtpu: 0.0.40
codegen_flags: <defaults>
</compile_context>

<pallas_src>
import functools

import jax
import jax.numpy as jnp
from jax.experimental import pallas as pl
from jax.experimental.pallas import tpu as pltpu


def _res2_kernel(x_ref, w_ref, b_ref, s_ref, t_ref, o_ref, cur_ref, *,
                 nums, scale, k, dilation, pad, t_out):
    # x_ref : (1, scale, w, T_pad)   one batch element, channel-split, time zero-padded
    # w_ref : (nums, k, w, w)        conv weights, tap-major
    # b_ref : (nums, w, 1)           conv bias
    # s_ref : (nums, w, 1)           folded BN scale  = gamma / sqrt(var + eps)
    # t_ref : (nums, w, 1)           folded BN shift  = beta - mean * scale
    # o_ref : (1, scale, w, T)       output (T == t_out)
    # cur_ref: VMEM scratch (w, T_pad) holding the padded conv input of the current branch
    prev = None
    for i in range(nums):
        # Build the zero-padded conv input for branch i.  The wrapper already
        # zero-padded x along T, so the edges of cur_ref are correct after the copy.
        cur_ref[...] = x_ref[0, i].astype(jnp.float32)
        if i > 0:
            cur_ref[:, pad:pad + t_out] = cur_ref[:, pad:pad + t_out] + prev

        # Dilated 1-D conv == sum over taps of a (w,w)@(w,T) matmul on shifted slices.
        acc = jnp.dot(w_ref[i, 0].astype(jnp.float32),
                      cur_ref[:, 0:t_out],
                      preferred_element_type=jnp.float32)
        for j in range(1, k):
            acc = acc + jnp.dot(w_ref[i, j].astype(jnp.float32),
                                cur_ref[:, j * dilation:j * dilation + t_out],
                                preferred_element_type=jnp.float32)
        acc = acc + b_ref[i].astype(jnp.float32)             # conv bias (w,1) broadcast

        y = jnp.maximum(acc, 0.0)                            # ReLU
        y = y * s_ref[i].astype(jnp.float32) + t_ref[i].astype(jnp.float32)  # folded BN

        o_ref[0, i] = y.astype(o_ref.dtype)
        prev = y

    if scale != 1:
        # Last chunk passes through untouched (strip the wrapper's zero padding).
        o_ref[0, nums] = x_ref[0, nums, :, pad:pad + t_out]


def res2conv1d_relu_bn(x, conv_w, conv_b, bn_gamma, bn_beta, bn_mean, bn_var, *,
                       scale=4, kernel_size=1, dilation=1, padding=0, eps=1e-5):
    """Res2Conv1dReluBn forward.

    x      : (B, C, T) float
    conv_w : (nums, width, width, kernel_size)   (PyTorch Conv1d weight layout per branch)
    conv_b : (nums, width)
    bn_*   : (nums, width)  eval-mode BatchNorm1d parameters / running stats
    Returns (B, C, T_out) with T_out == T (same-length conv required by the module).
    """
    B, C, T = x.shape
    assert C % scale == 0
    width = C // scale
    nums = scale if scale == 1 else scale - 1
    k = kernel_size
    t_out = T + 2 * padding - dilation * (k - 1)
    # The module adds conv outputs to raw chunks and concatenates them, so the conv must
    # be length-preserving (stride=1, "same"-style padding).
    assert t_out == T, (t_out, T)

    # Rearrange weights tap-major so w_ref[i, j] is a clean (w, w) tile.
    w_k = jnp.transpose(conv_w, (0, 3, 1, 2))                     # (nums, k, w, w)
    b_k = conv_b.reshape(nums, width, 1)
    bn_s = (bn_gamma / jnp.sqrt(bn_var + eps)).reshape(nums, width, 1)
    bn_t = (bn_beta.reshape(nums, width, 1)
            - bn_mean.reshape(nums, width, 1) * bn_s)

    t_pad = T + 2 * padding
    x_pad = jnp.pad(x, ((0, 0), (0, 0), (padding, padding))) if padding else x
    x_r = x_pad.reshape(B, scale, width, t_pad)

    kernel = functools.partial(_res2_kernel, nums=nums, scale=scale, k=k,
                               dilation=dilation, pad=padding, t_out=t_out)

    out = pl.pallas_call(
        kernel,
        out_shape=jax.ShapeDtypeStruct((B, scale, width, t_out), x.dtype),
        grid=(B,),
        in_specs=[
            pl.BlockSpec((1, scale, width, t_pad), lambda b: (b, 0, 0, 0)),  # x slab
            pl.BlockSpec((nums, k, width, width), lambda b: (0, 0, 0, 0)),   # conv W
            pl.BlockSpec((nums, width, 1), lambda b: (0, 0, 0)),             # conv b
            pl.BlockSpec((nums, width, 1), lambda b: (0, 0, 0)),             # BN scale
            pl.BlockSpec((nums, width, 1), lambda b: (0, 0, 0)),             # BN shift
        ],
        out_specs=pl.BlockSpec((1, scale, width, t_out), lambda b: (b, 0, 0, 0)),
        scratch_shapes=[pltpu.VMEM((width, t_pad), jnp.float32)],
        compiler_params=pltpu.CompilerParams(dimension_semantics=("parallel",)),
    )(x_r, w_k, b_k, bn_s, bn_t)

    return out.reshape(B, C, t_out)


def _reference(x, conv_w, conv_b, bn_gamma, bn_beta, bn_mean, bn_var, *,
               scale, kernel_size, dilation, padding, eps=1e-5):
    """Pure-JAX reference mirroring the PyTorch forward (eval-mode BN)."""
    B, C, T = x.shape
    width = C // scale
    nums = scale if scale == 1 else scale - 1
    k = kernel_size
    t_out = T + 2 * padding - dilation * (k - 1)
    chunks = [x[:, i * width:(i + 1) * width, :] for i in range(scale)]
    outs = []
    sp = None
    for i in range(nums):
        sp = chunks[i] if i == 0 else sp + chunks[i]
        sp_pad = jnp.pad(sp, ((0, 0), (0, 0), (padding, padding)))
        acc = jnp.zeros((B, width, t_out), jnp.float32)
        for j in range(k):
            acc = acc + jnp.einsum(
                "oc,bct->bot", conv_w[i, :, :, j],
                sp_pad[:, :, j * dilation:j * dilation + t_out],
                precision=jax.lax.Precision.HIGHEST)
        y = acc + conv_b[i][None, :, None]
        y = jnp.maximum(y, 0.0)
        s = bn_gamma[i] / jnp.sqrt(bn_var[i] + eps)
        y = y * s[None, :, None] + (bn_beta[i] - bn_mean[i] * s)[None, :, None]
        outs.append(y)
        sp = y
    if scale != 1:
        outs.append(chunks[nums])
    return jnp.concatenate(outs, axis=1)


if __name__ == "__main__":
    key = jax.random.PRNGKey(0)

    def run_case(case_key, *, B, channels, T, scale, kernel_size, dilation, padding):
        width = channels // scale
        nums = scale if scale == 1 else scale - 1
        keys = jax.random.split(case_key, 7)
        x = jax.random.normal(keys[0], (B, channels, T), dtype=jnp.float32)
        conv_w = jax.random.normal(keys[1], (nums, width, width, kernel_size),
                                   dtype=jnp.float32) * 0.1
        conv_b = jax.random.normal(keys[2], (nums, width), dtype=jnp.float32) * 0.1
        bn_g = 1.0 + 0.1 * jax.random.normal(keys[3], (nums, width), dtype=jnp.float32)
        bn_b = 0.1 * jax.random.normal(keys[4], (nums, width), dtype=jnp.float32)
        bn_m = 0.1 * jax.random.normal(keys[5], (nums, width), dtype=jnp.float32)
        bn_v = jnp.abs(jax.random.normal(keys[6], (nums, width), dtype=jnp.float32)) + 0.5

        out = res2conv1d_relu_bn(x, conv_w, conv_b, bn_g, bn_b, bn_m, bn_v,
                                 scale=scale, kernel_size=kernel_size,
                                 dilation=dilation, padding=padding)
        jax.block_until_ready(out)

        ref = _reference(x, conv_w, conv_b, bn_g, bn_b, bn_m, bn_v,
                         scale=scale, kernel_size=kernel_size,
                         dilation=dilation, padding=padding)
        assert out.shape == ref.shape, (out.shape, ref.shape)
        err = float(jnp.max(jnp.abs(out - ref)))
        assert err < 1e-4, err

    k1, k2, k3 = jax.random.split(key, 3)
    # Module defaults: pointwise conv.
    run_case(k1, B=2, channels=16, T=24, scale=4, kernel_size=1, dilation=1, padding=0)
    # ECAPA-style: kernel_size=3, same padding.
    run_case(k2, B=2, channels=16, T=24, scale=4, kernel_size=3, dilation=1, padding=1)
    # Dilated variant, more branches.
    run_case(k3, B=2, channels=32, T=32, scale=8, kernel_size=3, dilation=2, padding=2)

    print("KERNEL_OK")
</pallas_src>

<mosaic_0001>
module attributes {stable_mosaic.version = 11 : i64} {
  func.func @_res2_kernel(%arg0: i32, %arg1: memref<1x4x4x24xf32, #tpu.memory_space<vmem>>, %arg2: memref<3x1x4x4xf32, #tpu.memory_space<vmem>>, %arg3: memref<3x4x1xf32, #tpu.memory_space<vmem>>, %arg4: memref<3x4x1xf32, #tpu.memory_space<vmem>>, %arg5: memref<3x4x1xf32, #tpu.memory_space<vmem>>, %arg6: memref<1x4x4x24xf32, #tpu.memory_space<vmem>>, %arg7: memref<4x24xf32, #tpu.memory_space<vmem>>) attributes {dimension_semantics = [#tpu.dimension_semantics<parallel>], iteration_bounds = array<i64: 2>, scalar_prefetch = 0 : i64, scratch_operands = 1 : i64, tpu.core_type = #tpu.core_type<tc>, window_params = [{transform_indices = @transform_0, window_bounds = array<i64: 1, 4, 4, 24>}, {pipeline_mode = #tpu.pipeline_mode<synchronous>, transform_indices = @transform_1, window_bounds = array<i64: 3, 1, 4, 4>}, {pipeline_mode = #tpu.pipeline_mode<synchronous>, transform_indices = @transform_2, window_bounds = array<i64: 3, 4, 1>}, {pipeline_mode = #tpu.pipeline_mode<synchronous>, transform_indices = @transform_3, window_bounds = array<i64: 3, 4, 1>}, {pipeline_mode = #tpu.pipeline_mode<synchronous>, transform_indices = @transform_4, window_bounds = array<i64: 3, 4, 1>}, {transform_indices = @transform_5, window_bounds = array<i64: 1, 4, 4, 24>}]} {
    %c0 = arith.constant 0 : index
    %c0_0 = arith.constant 0 : index
    %c0_1 = arith.constant 0 : index
    %c0_2 = arith.constant 0 : index
    %0 = vector.load %arg1[%c0, %c0_0, %c0_1, %c0_2] : memref<1x4x4x24xf32, #tpu.memory_space<vmem>>, vector<1x1x4x24xf32>
    %1 = vector.shape_cast %0 : vector<1x1x4x24xf32> to vector<4x24xf32>
    %c0_3 = arith.constant 0 : index
    %c0_4 = arith.constant 0 : index
    %2 = vector.load %arg7[%c0_3, %c0_4] : memref<4x24xf32, #tpu.memory_space<vmem>>, vector<4x24xf32>
    tpu.vector_store %arg7[%c0_3, %c0_4], %1 {strides = array<i32>} : memref<4x24xf32, #tpu.memory_space<vmem>>, vector<4x24xf32>,
    %c0_5 = arith.constant 0 : index
    %c0_6 = arith.constant 0 : index
    %c0_7 = arith.constant 0 : index
    %c0_8 = arith.constant 0 : index
    %3 = vector.load %arg2[%c0_5, %c0_6, %c0_7, %c0_8] : memref<3x1x4x4xf32, #tpu.memory_space<vmem>>, vector<1x1x4x4xf32>
    %4 = vector.shape_cast %3 : vector<1x1x4x4xf32> to vector<4x4xf32>
    %c0_9 = arith.constant 0 : index
    %c0_10 = arith.constant 0 : index
    %5 = vector.load %arg7[%c0_9, %c0_10] : memref<4x24xf32, #tpu.memory_space<vmem>>, vector<4x24xf32>
    %cst = arith.constant dense<0.000000e+00> : vector<4x24xf32>
    %6 = tpu.matmul %4, %5, %cst {dimension_numbers = #tpu.dot_dimension_numbers<[1], [0], [0], [1], [0, 0, 1, 1], [], []>} : vector<4x4xf32>, vector<4x24xf32>, vector<4x24xf32> -> vector<4x24xf32>
    %c0_11 = arith.constant 0 : index
    %c0_12 = arith.constant 0 : index
    %c0_13 = arith.constant 0 : index
    %7 = vector.load %arg3[%c0_11, %c0_12, %c0_13] : memref<3x4x1xf32, #tpu.memory_space<vmem>>, vector<1x4x1xf32>
    %8 = vector.shape_cast %7 : vector<1x4x1xf32> to vector<4x1xf32>
    %9 = vector.broadcast %8 : vector<4x1xf32> to vector<4x24xf32>
    %10 = arith.addf %6, %9 : vector<4x24xf32>
    %cst_14 = arith.constant 0.000000e+00 : f32
    %11 = vector.broadcast %cst_14 : f32 to vector<4x24xf32>
    %12 = arith.maximumf %10, %11 : vector<4x24xf32>
    %c0_15 = arith.constant 0 : index
    %c0_16 = arith.constant 0 : index
    %c0_17 = arith.constant 0 : index
    %13 = vector.load %arg4[%c0_15, %c0_16, %c0_17] : memref<3x4x1xf32, #tpu.memory_space<vmem>>, vector<1x4x1xf32>
    %14 = vector.shape_cast %13 : vector<1x4x1xf32> to vector<4x1xf32>
    %15 = vector.broadcast %14 : vector<4x1xf32> to vector<4x24xf32>
    %16 = arith.mulf %12, %15 : vector<4x24xf32>
    %c0_18 = arith.constant 0 : index
    %c0_19 = arith.constant 0 : index
    %c0_20 = arith.constant 0 : index
    %17 = vector.load %arg5[%c0_18, %c0_19, %c0_20] : memref<3x4x1xf32, #tpu.memory_space<vmem>>, vector<1x4x1xf32>
    %18 = vector.shape_cast %17 : vector<1x4x1xf32> to vector<4x1xf32>
    %19 = vector.broadcast %18 : vector<4x1xf32> to vector<4x24xf32>
    %20 = arith.addf %16, %19 : vector<4x24xf32>
    %c0_21 = arith.constant 0 : index
    %c0_22 = arith.constant 0 : index
    %c0_23 = arith.constant 0 : index
    %c0_24 = arith.constant 0 : index
    %21 = vector.load %arg6[%c0_21, %c0_22, %c0_23, %c0_24] : memref<1x4x4x24xf32, #tpu.memory_space<vmem>>, vector<1x1x4x24xf32>
    %22 = vector.shape_cast %21 : vector<1x1x4x24xf32> to vector<4x24xf32>
    %23 = vector.shape_cast %20 : vector<4x24xf32> to vector<1x1x4x24xf32>
    tpu.vector_store %arg6[%c0_21, %c0_22, %c0_23, %c0_24], %23 {strides = array<i32>} : memref<1x4x4x24xf32, #tpu.memory_space<vmem>>, vector<1x1x4x24xf32>,
    %c0_25 = arith.constant 0 : index
    %c1 = arith.constant 1 : index
    %c0_26 = arith.constant 0 : index
    %c0_27 = arith.constant 0 : index
    %24 = vector.load %arg1[%c0_25, %c1, %c0_26, %c0_27] : memref<1x4x4x24xf32, #tpu.memory_space<vmem>>, vector<1x1x4x24xf32>
    %25 = vector.shape_cast %24 : vector<1x1x4x24xf32> to vector<4x24xf32>
    %c0_28 = arith.constant 0 : index
    %c0_29 = arith.constant 0 : index
    %26 = vector.load %arg7[%c0_28, %c0_29] : memref<4x24xf32, #tpu.memory_space<vmem>>, vector<4x24xf32>
    tpu.vector_store %arg7[%c0_28, %c0_29], %25 {strides = array<i32>} : memref<4x24xf32, #tpu.memory_space<vmem>>, vector<4x24xf32>,
    %c0_30 = arith.constant 0 : index
    %c0_31 = arith.constant 0 : index
    %27 = vector.load %arg7[%c0_30, %c0_31] : memref<4x24xf32, #tpu.memory_space<vmem>>, vector<4x24xf32>
    %28 = arith.addf %27, %20 : vector<4x24xf32>
    %c0_32 = arith.constant 0 : index
    %c0_33 = arith.constant 0 : index
    %29 = vector.load %arg7[%c0_32, %c0_33] : memref<4x24xf32, #tpu.memory_space<vmem>>, vector<4x24xf32>
    tpu.vector_store %arg7[%c0_32, %c0_33], %28 {strides = array<i32>} : memref<4x24xf32, #tpu.memory_space<vmem>>, vector<4x24xf32>,
    %c1_34 = arith.constant 1 : index
    %c0_35 = arith.constant 0 : index
    %c0_36 = arith.constant 0 : index
    %c0_37 = arith.constant 0 : index
    %30 = vector.load %arg2[%c1_34, %c0_35, %c0_36, %c0_37] : memref<3x1x4x4xf32, #tpu.memory_space<vmem>>, vector<1x1x4x4xf32>
    %31 = vector.shape_cast %30 : vector<1x1x4x4xf32> to vector<4x4xf32>
    %c0_38 = arith.constant 0 : index
    %c0_39 = arith.constant 0 : index
    %32 = vector.load %arg7[%c0_38, %c0_39] : memref<4x24xf32, #tpu.memory_space<vmem>>, vector<4x24xf32>
    %cst_40 = arith.constant dense<0.000000e+00> : vector<4x24xf32>
    %33 = tpu.matmul %31, %32, %cst_40 {dimension_numbers = #tpu.dot_dimension_numbers<[1], [0], [0], [1], [0, 0, 1, 1], [], []>} : vector<4x4xf32>, vector<4x24xf32>, vector<4x24xf32> -> vector<4x24xf32>
    %c1_41 = arith.constant 1 : index
    %c0_42 = arith.constant 0 : index
    %c0_43 = arith.constant 0 : index
    %34 = vector.load %arg3[%c1_41, %c0_42, %c0_43] : memref<3x4x1xf32, #tpu.memory_space<vmem>>, vector<1x4x1xf32>
    %35 = vector.shape_cast %34 : vector<1x4x1xf32> to vector<4x1xf32>
    %36 = vector.broadcast %35 : vector<4x1xf32> to vector<4x24xf32>
    %37 = arith.addf %33, %36 : vector<4x24xf32>
    %cst_44 = arith.constant 0.000000e+00 : f32
    %38 = vector.broadcast %cst_44 : f32 to vector<4x24xf32>
    %39 = arith.maximumf %37, %38 : vector<4x24xf32>
    %c1_45 = arith.constant 1 : index
    %c0_46 = arith.constant 0 : index
    %c0_47 = arith.constant 0 : index
    %40 = vector.load %arg4[%c1_45, %c0_46, %c0_47] : memref<3x4x1xf32, #tpu.memory_space<vmem>>, vector<1x4x1xf32>
    %41 = vector.shape_cast %40 : vector<1x4x1xf32> to vector<4x1xf32>
    %42 = vector.broadcast %41 : vector<4x1xf32> to vector<4x24xf32>
    %43 = arith.mulf %39, %42 : vector<4x24xf32>
    %c1_48 = arith.constant 1 : index
    %c0_49 = arith.constant 0 : index
    %c0_50 = arith.constant 0 : index
    %44 = vector.load %arg5[%c1_48, %c0_49, %c0_50] : memref<3x4x1xf32, #tpu.memory_space<vmem>>, vector<1x4x1xf32>
    %45 = vector.shape_cast %44 : vector<1x4x1xf32> to vector<4x1xf32>
    %46 = vector.broadcast %45 : vector<4x1xf32> to vector<4x24xf32>
    %47 = arith.addf %43, %46 : vector<4x24xf32>
    %c0_51 = arith.constant 0 : index
    %c1_52 = arith.constant 1 : index
    %c0_53 = arith.constant 0 : index
    %c0_54 = arith.constant 0 : index
    %48 = vector.load %arg6[%c0_51, %c1_52, %c0_53, %c0_54] : memref<1x4x4x24xf32, #tpu.memory_space<vmem>>, vector<1x1x4x24xf32>
    %49 = vector.shape_cast %48 : vector<1x1x4x24xf32> to vector<4x24xf32>
    %50 = vector.shape_cast %47 : vector<4x24xf32> to vector<1x1x4x24xf32>
    tpu.vector_store %arg6[%c0_51, %c1_52, %c0_53, %c0_54], %50 {strides = array<i32>} : memref<1x4x4x24xf32, #tpu.memory_space<vmem>>, vector<1x1x4x24xf32>,
    %c0_55 = arith.constant 0 : index
    %c2 = arith.constant 2 : index
    %c0_56 = arith.constant 0 : index
    %c0_57 = arith.constant 0 : index
    %51 = vector.load %arg1[%c0_55, %c2, %c0_56, %c0_57] : memref<1x4x4x24xf32, #tpu.memory_space<vmem>>, vector<1x1x4x24xf32>
    %52 = vector.shape_cast %51 : vector<1x1x4x24xf32> to vector<4x24xf32>
    %c0_58 = arith.constant 0 : index
    %c0_59 = arith.constant 0 : index
    %53 = vector.load %arg7[%c0_58, %c0_59] : memref<4x24xf32, #tpu.memory_space<vmem>>, vector<4x24xf32>
    tpu.vector_store %arg7[%c0_58, %c0_59], %52 {strides = array<i32>} : memref<4x24xf32, #tpu.memory_space<vmem>>, vector<4x24xf32>,
    %c0_60 = arith.constant 0 : index
    %c0_61 = arith.constant 0 : index
    %54 = vector.load %arg7[%c0_60, %c0_61] : memref<4x24xf32, #tpu.memory_space<vmem>>, vector<4x24xf32>
    %55 = arith.addf %54, %47 : vector<4x24xf32>
    %c0_62 = arith.constant 0 : index
    %c0_63 = arith.constant 0 : index
    %56 = vector.load %arg7[%c0_62, %c0_63] : memref<4x24xf32, #tpu.memory_space<vmem>>, vector<4x24xf32>
    tpu.vector_store %arg7[%c0_62, %c0_63], %55 {strides = array<i32>} : memref<4x24xf32, #tpu.memory_space<vmem>>, vector<4x24xf32>,
    %c2_64 = arith.constant 2 : index
    %c0_65 = arith.constant 0 : index
    %c0_66 = arith.constant 0 : index
    %c0_67 = arith.constant 0 : index
    %57 = vector.load %arg2[%c2_64, %c0_65, %c0_66, %c0_67] : memref<3x1x4x4xf32, #tpu.memory_space<vmem>>, vector<1x1x4x4xf32>
    %58 = vector.shape_cast %57 : vector<1x1x4x4xf32> to vector<4x4xf32>
    %c0_68 = arith.constant 0 : index
    %c0_69 = arith.constant 0 : index
    %59 = vector.load %arg7[%c0_68, %c0_69] : memref<4x24xf32, #tpu.memory_space<vmem>>, vector<4x24xf32>
    %cst_70 = arith.constant dense<0.000000e+00> : vector<4x24xf32>
    %60 = tpu.matmul %58, %59, %cst_70 {dimension_numbers = #tpu.dot_dimension_numbers<[1], [0], [0], [1], [0, 0, 1, 1], [], []>} : vector<4x4xf32>, vector<4x24xf32>, vector<4x24xf32> -> vector<4x24xf32>
    %c2_71 = arith.constant 2 : index
    %c0_72 = arith.constant 0 : index
    %c0_73 = arith.constant 0 : index
    %61 = vector.load %arg3[%c2_71, %c0_72, %c0_73] : memref<3x4x1xf32, #tpu.memory_space<vmem>>, vector<1x4x1xf32>
    %62 = vector.shape_cast %61 : vector<1x4x1xf32> to vector<4x1xf32>
    %63 = vector.broadcast %62 : vector<4x1xf32> to vector<4x24xf32>
    %64 = arith.addf %60, %63 : vector<4x24xf32>
    %cst_74 = arith.constant 0.000000e+00 : f32
    %65 = vector.broadcast %cst_74 : f32 to vector<4x24xf32>
    %66 = arith.maximumf %64, %65 : vector<4x24xf32>
    %c2_75 = arith.constant 2 : index
    %c0_76 = arith.constant 0 : index
    %c0_77 = arith.constant 0 : index
    %67 = vector.load %arg4[%c2_75, %c0_76, %c0_77] : memref<3x4x1xf32, #tpu.memory_space<vmem>>, vector<1x4x1xf32>
    %68 = vector.shape_cast %67 : vector<1x4x1xf32> to vector<4x1xf32>
    %69 = vector.broadcast %68 : vector<4x1xf32> to vector<4x24xf32>
    %70 = arith.mulf %66, %69 : vector<4x24xf32>
    %c2_78 = arith.constant 2 : index
    %c0_79 = arith.constant 0 : index
    %c0_80 = arith.constant 0 : index
    %71 = vector.load %arg5[%c2_78, %c0_79, %c0_80] : memref<3x4x1xf32, #tpu.memory_space<vmem>>, vector<1x4x1xf32>
    %72 = vector.shape_cast %71 : vector<1x4x1xf32> to vector<4x1xf32>
    %73 = vector.broadcast %72 : vector<4x1xf32> to vector<4x24xf32>
    %74 = arith.addf %70, %73 : vector<4x24xf32>
    %c0_81 = arith.constant 0 : index
    %c2_82 = arith.constant 2 : index
    %c0_83 = arith.constant 0 : index
    %c0_84 = arith.constant 0 : index
    %75 = vector.load %arg6[%c0_81, %c2_82, %c0_83, %c0_84] : memref<1x4x4x24xf32, #tpu.memory_space<vmem>>, vector<1x1x4x24xf32>
    %76 = vector.shape_cast %75 : vector<1x1x4x24xf32> to vector<4x24xf32>
    %77 = vector.shape_cast %74 : vector<4x24xf32> to vector<1x1x4x24xf32>
    tpu.vector_store %arg6[%c0_81, %c2_82, %c0_83, %c0_84], %77 {strides = array<i32>} : memref<1x4x4x24xf32, #tpu.memory_space<vmem>>, vector<1x1x4x24xf32>,
    %c0_85 = arith.constant 0 : index
    %c3 = arith.constant 3 : index
    %c0_86 = arith.constant 0 : index
    %c0_87 = arith.constant 0 : index
    %78 = vector.load %arg1[%c0_85, %c3, %c0_86, %c0_87] : memref<1x4x4x24xf32, #tpu.memory_space<vmem>>, vector<1x1x4x24xf32>
    %79 = vector.shape_cast %78 : vector<1x1x4x24xf32> to vector<4x24xf32>
    %c0_88 = arith.constant 0 : index
    %c3_89 = arith.constant 3 : index
    %c0_90 = arith.constant 0 : index
    %c0_91 = arith.constant 0 : index
    %80 = vector.load %arg6[%c0_88, %c3_89, %c0_90, %c0_91] : memref<1x4x4x24xf32, #tpu.memory_space<vmem>>, vector<1x1x4x24xf32>
    %81 = vector.shape_cast %80 : vector<1x1x4x24xf32> to vector<4x24xf32>
    %82 = vector.shape_cast %79 : vector<4x24xf32> to vector<1x1x4x24xf32>
    tpu.vector_store %arg6[%c0_88, %c3_89, %c0_90, %c0_91], %82 {strides = array<i32>} : memref<1x4x4x24xf32, #tpu.memory_space<vmem>>, vector<1x1x4x24xf32>,
    return
  }
  func.func @transform_0(%arg0: i32) -> (i32, i32, i32, i32) {
    %c0_i32 = arith.constant 0 : i32
    %c0_i32_0 = arith.constant 0 : i32
    %c0_i32_1 = arith.constant 0 : i32
    %c0_i32_2 = arith.constant 0 : i32
    return %arg0, %c0_i32, %c0_i32_0, %c0_i32_1 : i32, i32, i32, i32
  }
  func.func @transform_1(%arg0: i32) -> (i32, i32, i32, i32) {
    %c0_i32 = arith.constant 0 : i32
    %c0_i32_0 = arith.constant 0 : i32
    %c0_i32_1 = arith.constant 0 : i32
    %c0_i32_2 = arith.constant 0 : i32
    %c0_i32_3 = arith.constant 0 : i32
    return %c0_i32, %c0_i32_0, %c0_i32_1, %c0_i32_2 : i32, i32, i32, i32
  }
  func.func @transform_2(%arg0: i32) -> (i32, i32, i32) {
    %c0_i32 = arith.constant 0 : i32
    %c0_i32_0 = arith.constant 0 : i32
    %c0_i32_1 = arith.constant 0 : i32
    %c0_i32_2 = arith.constant 0 : i32
    return %c0_i32, %c0_i32_0, %c0_i32_1 : i32, i32, i32
  }
  func.func @transform_3(%arg0: i32) -> (i32, i32, i32) {
    %c0_i32 = arith.constant 0 : i32
    %c0_i32_0 = arith.constant 0 : i32
    %c0_i32_1 = arith.constant 0 : i32
    %c0_i32_2 = arith.constant 0 : i32
    return %c0_i32, %c0_i32_0, %c0_i32_1 : i32, i32, i32
  }
  func.func @transform_4(%arg0: i32) -> (i32, i32, i32) {
    %c0_i32 = arith.constant 0 : i32
    %c0_i32_0 = arith.constant 0 : i32
    %c0_i32_1 = arith.constant 0 : i32
    %c0_i32_2 = arith.constant 0 : i32
    return %c0_i32, %c0_i32_0, %c0_i32_1 : i32, i32, i32
  }
  func.func @transform_5(%arg0: i32) -> (i32, i32, i32, i32) {
    %c0_i32 = arith.constant 0 : i32
    %c0_i32_0 = arith.constant 0 : i32
    %c0_i32_1 = arith.constant 0 : i32
    %c0_i32_2 = arith.constant 0 : i32
    return %arg0, %c0_i32, %c0_i32_0, %c0_i32_1 : i32, i32, i32, i32
  }
}

</mosaic_0001>

<bundles_post_ra>
// kernel: tpu_custom_call.1
= control target key start
LH: loop header
LB: loop body
LE: loop exit
PB: predicated region body
PF: predicated region fallthrough
CT: control target
= control target key end

     0   :  { %10 = vsyncpa [#allocation4], 0  ;;  %s1002_s0 = inlined_call_operand.vmem [shape: f32[2,4,4,24], index: 0, kind: input, shape index: {}]   ;;  %s1003_s1 = inlined_call_operand.vmem [shape: f32[3,1,4,4], index: 1, kind: input, shape index: {}]   ;;  %s1004_s2 = inlined_call_operand.vmem [shape: f32[3,4,1], index: 2, kind: input, shape index: {}]   ;;  %s1005_s3 = inlined_call_operand.vmem [shape: f32[3,4,1], index: 3, kind: input, shape index: {}]   ;;  %s1006_s4 = inlined_call_operand.vmem [shape: f32[3,4,1], index: 4, kind: input, shape index: {}]   ;;  %s1007_s5 = inlined_call_operand.hbm [shape: f32[2,4,4,24], index: 5, kind: output, shape index: {}]  }
   0x1   :  { %12 = vsyncpa [#allocation4 + $0x1], 0  ;;  %s829_s18 = smov 0   ;;  %s831_s19 = smov 0  }
   0x2   :  { %s833_s20 = smov 0   ;;  %s835_s21 = smov 0  }
   0x3 LB: > { %s850_s22 = sadd.s32 4294967295, %s791_s21   ;;  %s630_s23 = sadd.s32 4294967294, %s791_s21   ;;  %s791_s21 = sphi %s835_s21, %s1013_s21   ;;  %s787_s20 = sphi %s833_s20, %s1012_s20   ;;  %s783_s19 = sphi %s831_s19, %s1011_s19   ;;  %s779_s18 = sphi %s829_s18, %s1010_s18  }
   0x4   : > { %s854_s24 = sadd.s32 1, %s791_s21   ;;  %s135_s25 = sadd.s32 1, %s787_s20 }
   0x5   : > { %s132_s26 = ssub.s32 %s791_s21, %s854_s24  ;;  %p145_p0 = scmp.ne.s32.totalorder %s787_s20, %s783_s19 }
   0x6   : > { %p133_p1 = scmp.eq.s32.totalorder %s132_s26, 0  ;;  %p146_p2 = scmp.eq.s32.totalorder %s850_s22, 1 }
   0x7   : > { %p151_p3 = scmp.ne.s32.totalorder %s783_s19, %s779_s18  ;;  %p152_p4 = scmp.eq.s32.totalorder %s630_s23, 1 }
   0x8   : > { %s865_s27 = scalar_select %p133_p1, %s787_s20, %s135_s25  }
   0x9   : > { %p867_p5 = por %p146_p2, %p145_p0  ;;  %p871_p6 = por %p152_p4, %p151_p3 }
   0xa   : > { %p633_p7 = scmp.ge.s32.totalorder %s791_s21, 1  ;;  %p190_p8 = scmp.lt.s32.totalorder %s791_s21, 3 }
   0xc   : > { %p191_p9 = pnand %p633_p7, %p190_p8 }
   0xd   : > { %p218_p10 = scmp.lt.s32.totalorder (!%p191_p9), %s850_s22, 1  ;;  %s215_s14 = sand.u32 (!%p191_p9), 1, %s783_s19  }
   0xe   : > { %194 = sbr.rel (%p191_p9) target bundleno = 672 (0x2a0), region = 40  ;;  %s634_s16 = sshll.u32 (!%p191_p9), %s215_s14, 4 }
   0xf   : > { %s926_s17 = scalar_lea.vmem (!%p191_p9), [#allocation3], %s634_s16  ;;  %s663_s6 = sshll.u32 (!%p191_p9), %s850_s22, 8 }
  0x10   : > { %s796_s11 = smov (!%p191_p9), [#allocation3]  }
  0x11   : > { %s735_s12 = sshll.u32 (!%p191_p9), %s796_s11, 4  ;;  %s736_s12 = int_to_ptr.vmem [resolvable:$false] %s735_s12 }
  0x12   : > { %s737_s13 = scalar_lea.vmem (!%p191_p9), %s736_s12, 512 }
  0x13   : > { %v793_v0 = vmov 0.0   ;;  %vm794_vm0 = vmmov 0   ;;  %v228_v1 = vld [vmem:[%s1004_s2] sm:$0xf]  ;;  %s219_s7 = scalar_select %p218_p10, %s850_s22, 1  ;;  %v795_v2 = vmov 0  }
  0x14   : > { %670 = vmatprep.subr.mxu0 %v793_v0  ;;  %672 = vmatprep.mubr.msk.f32.mxu0 %vm794_vm0, %v793_v0  ;;  %v320_v3 = vld [vmem:[%s1006_s4] sm:$0xf]  ;;  %vm224_vm1 = vcmask 191488   ;;  %v641_v5 = vld [vmem:[%s1004_s2 + $0x4] sm:$0xf]  ;;  %vm238_vm2 = vcmask 1043456  }
  0x15   : > { %729 = vset.pattern.permute.xlu0 %v795_v2  ;;  %730 = vset.pattern.permute.xlu1 %v795_v2  ;;  %s662_s10 = sshll.u32 %s219_s7, 4  ;;  %v313_v4 = vld [vmem:[%s1005_s3] sm:$0xf]  ;;  %v644_v7 = vld [vmem:[%s1005_s3 + $0x4] sm:$0xf]  ;;  %vm234_vm3 = vcmask 31744  }
  0x16   : > { %231 = vperm.xlu0 %729, %v228_v1   ;;  %675 = vmatprep.subr.mxu1 %v793_v0  ;;  %s893_s15 = scalar_lea.vmem %s1002_s0, %s662_s10  ;;  %v645_v8 = vld [vmem:[%s1006_s4 + $0x4] sm:$0xf]  ;;  %v649_v10 = vld [vmem:[%s1004_s2 + $0x8] sm:$0xf]  ;;  %v226_v11 = vld [vmem:[%s1003_s1] sm:$0xf]  ;;  %s954_s10 = scalar_lea.hbm %s1007_s5, %s663_s6 }
  0x17   : > { %323 = vperm.xlu1 %730, %v320_v3   ;;  %677 = vmatprep.mubr.msk.f32.mxu1 %vm794_vm0, %v793_v0  ;;  %v223_v6 = vld [vmem:[%s893_s15] sm:$0xf]  ;;  %v639_v9 = vld [vmem:[%s893_s15 + $0x4] sm:$0xf]  ;;  %v652_v12 = vld [vmem:[%s1005_s3 + $0x8] sm:$0xf] }
  0x18   : > { %225 = vst.msk [vmem:[#allocation2] sm:$0xf] %vm224_vm1, %v223_v6  ;;  %v653_v14 = vld [vmem:[%s1006_s4 + $0x8] sm:$0xf]  ;;  %v640_v27 = vld [vmem:[%s1003_s1 + $0x4] sm:$0xf] }
  0x19   : > { %v647_v26 = vld [vmem:[%s893_s15 + $0x8] sm:$0xf]  ;;  %v655_v42 = vld [vmem:[%s893_s15 + $0xc] sm:$0xf]  ;;  %s568_s7 = sshll.u32 %s926_s17, 4  ;;  %s962_s15 = scalar_lea.sflag [#allocation4], %s215_s14  ;;  %s956_s7 = int_to_ptr.vmem [resolvable:$true] %s568_s7 }
  0x1a   : > { %316 = vperm.xlu0 %729, %v313_v4   ;;  %v648_v40 = vld [vmem:[%s1003_s1 + $0x8] sm:$0xf]  ;;  %656 = vst.msk [vmem:[%s926_s17 + $0xc] sm:$0xf] %vm224_vm1, %v655_v42  ;;  %s731_s22 = scalar_lea.vmem %s956_s7, 256  ;;  %p738_p0 = scmp.lt.s32.totalorder %s956_s7, %s736_s12 }
  0x1b   : > { %341 = vperm.xlu1 %730, %v641_v5   ;;  %p732_p11 = scmp.ne.s32.totalorder %s956_s7, %s731_s22  ;;  %p739_p1 = scmp.lt.s32.totalorder %s737_s13, %s731_s22 }
  0x1d   : > { %p733_p12 = pnand %p732_p11, %p867_p5  ;;  %p740_p2 = por %p739_p1, %p738_p0 }
  0x1e   : > { %425 = vperm.xlu0 %729, %v644_v7  }
  0x1f   : > { %433 = vperm.xlu1 %730, %v645_v8   ;;  %v227_v13 = vld [vmem:[#allocation2] sm:$0xf]  ;;  %p734_p13 = pneg %p733_p12 }
  0x20   : > { %671 = vmatpush3.msk.msra.mxu0 %vm238_vm2, %v227_v13  ;;  %330 = vst.msk [vmem:[#allocation2] sm:$0xf] %vm224_vm1, %v639_v9 }
  0x21   : > { %673 = vmatmul.mubr.msk.f32.vlgmr.msra.gmra.mxu0 %vm234_vm3, %v226_v11  ;;  %680 = vmatprep.subr.mxu0 %v793_v0  ;;  %p741_p3 = pnand %p740_p2, %p734_p13 }
  0x22   : > { %452 = vperm.xlu0 %729, %v649_v10   ;;  %682 = vmatprep.mubr.msk.f32.mxu0 %vm794_vm0, %v793_v0 }
  0x23   : > { %536 = vperm.xlu1 %730, %v652_v12  }
  0x26   : > { %544 = vperm.xlu0 %729, %v653_v14  }
  0x27   : > { %v331_v23 = vld [vmem:[#allocation2] sm:$0xf] }
  0x91   : > { %v232_v15 = vpop.permute.xlu0 %231 }
  0x92   : > { %v324_v22 = vpop.permute.xlu1 %323 }
  0x95   : > { %v317_v20 = vpop.permute.xlu0 %316 }
  0x96   : > { %v342_v29 = vpop.permute.xlu1 %341 }
  0x99   : > { %v426_v34 = vpop.permute.xlu0 %425 }
  0x9a   : > { %v434_v36 = vpop.permute.xlu1 %433 }
  0x9d   : > { %v453_v43 = vpop.permute.xlu0 %452 }
  0x9e   : > { %v537_v48 = vpop.permute.xlu1 %536 }
  0xa1   : > { %v545_v50 = vpop.permute.xlu0 %544 }
  0xe1   : > { %v308_v16 = vpop.f32.mrf.mxu0 }
  0xe2   : > { %v309_v17 = vadd.f32 %v308_v16, %v232_v15 }
  0xe3   : > { %v674_v18 = vpop.f32.mrf.mxu0 }
  0xe4   : > { %v312_v19 = vmax.f32 %v309_v17, 0.0 }
  0xe6   : > { %v319_v21 = vmul.f32 %v317_v20, %v312_v19 }
  0xe8   : > { %v326_v24 = vadd.f32 %v324_v22, %v319_v21 }
  0xea   : > { %327 = vst.msk [vmem:[%s926_s17] sm:$0xf] %vm224_vm1, %v326_v24  ;;  %v332_v25 = vadd.f32 %v331_v23, %v326_v24 }
  0xec   : > { %333 = vst.msk [vmem:[#allocation2] sm:$0xf] %vm224_vm1, %v332_v25 }
  0xf3   : > { %v336_v28 = vld [vmem:[#allocation2] sm:$0xf] }
  0xf4   : > { %676 = vmatpush3.msk.msra.mxu1 %vm238_vm2, %v336_v28  ;;  %441 = vst.msk [vmem:[#allocation2] sm:$0xf] %vm224_vm1, %v647_v26 }
  0xf5   : > { %678 = vmatmul.mubr.msk.f32.vlgmr.msra.gmra.mxu1 %vm234_vm3, %v640_v27 }
  0xfb   : > { %v442_v37 = vld [vmem:[#allocation2] sm:$0xf] }
 0x1b5   : > { %v416_v30 = vpop.f32.mrf.mxu1 }
 0x1b6   : > { %v417_v31 = vadd.f32 %v416_v30, %v342_v29 }
 0x1b7   : > { %v679_v32 = vpop.f32.mrf.mxu1 }
 0x1b8   : > { %v420_v33 = vmax.f32 %v417_v31, 0.0 }
 0x1ba   : > { %v428_v35 = vmul.f32 %v426_v34, %v420_v33 }
 0x1bc   : > { %v436_v38 = vadd.f32 %v434_v36, %v428_v35 }
 0x1be   : > { %646 = vst.msk [vmem:[%s926_s17 + $0x4] sm:$0xf] %vm224_vm1, %v436_v38  ;;  %v443_v39 = vadd.f32 %v442_v37, %v436_v38 }
 0x1c0   : > { %444 = vst.msk [vmem:[#allocation2] sm:$0xf] %vm224_vm1, %v443_v39 }
 0x1c7   : > { %v447_v41 = vld [vmem:[#allocation2] sm:$0xf] }
 0x1c8   : > { %681 = vmatpush3.msk.msra.mxu0 %vm238_vm2, %v447_v41 }
 0x1c9   : > { %683 = vmatmul.mubr.msk.f32.vlgmr.msra.gmra.mxu0 %vm234_vm3, %v648_v40 }
 0x289   : > { %v527_v44 = vpop.f32.mrf.mxu0 }
 0x28a   : > { %v528_v45 = vadd.f32 %v527_v44, %v453_v43 }
 0x28b   : > { %v684_v46 = vpop.f32.mrf.mxu0 }
 0x28c   : > { %v531_v47 = vmax.f32 %v528_v45, 0.0 }
 0x28e   : > { %v539_v49 = vmul.f32 %v537_v48, %v531_v47 }
 0x290   : > { %v547_v51 = vadd.f32 %v545_v50, %v539_v49 }
 0x292   : > { %654 = vst.msk [vmem:[%s926_s17 + $0x8] sm:$0xf] %vm224_vm1, %v547_v51 }
 0x293   : > { %744 = shalt.err (!%p741_p3)
}
 0x294   : > { %s745_s14 = scalar_lea.hbm %s954_s10, 256  ;;  %s749_s23 = scalar_lea.hbm %s1007_s5, 512 }
 0x295   : > { %p746_p4 = scmp.ne.s32.totalorder %s954_s10, %s745_s14  ;;  %p750_p9 = scmp.lt.s32.totalorder %s954_s10, %s1007_s5 }
 0x296   : > { %p751_p10 = scmp.lt.s32.totalorder %s749_s23, %s745_s14 }
 0x297   : > { %p747_p7 = pnand %p746_p4, %p867_p5 }
 0x298   : > { %p752_p11 = por %p751_p10, %p750_p9 }
 0x299   : > { %p748_p8 = pneg %p747_p7 }
 0x29b   : > { %p753_p12 = pnand %p752_p11, %p748_p8 }
 0x29d   : > { %756 = shalt.err (!%p753_p12)
}
 0x29e   : > { %s797_s30 = smov 64   ;;  %s798_s6 = smov 4  }
 0x29f   : > { %685 = dma.vmem_to_hbm [thread:$0]  (%p867_p5), %s956_s7, 256, %s954_s10, %s962_s15, %s797_s30, %s797_s30, %s798_s6  }
 0x2a0 PF: > { %p691_p13 = scmp.ge.s32.totalorder %s791_s21, 2  ;;  %s583_s8 = sand.u32 1, %s779_s18  }
 0x2a1   : > { %s584_s9 = scalar_lea.sflag [#allocation4], %s583_s8 }
 0x2a2   : > { %p688_p0 = pnand %p691_p13, %p871_p6 }
 0x2a4   : > { %p689_p1 = pneg %p688_p0 }
 0x2a6   : > { %774 = dma.done.wait (%p689_p1), %s584_s9, 256  }
 0x2a7   : > { %776 = vsyncadd (%p689_p1), %s584_s9, 4294967040  ;;  %p15_p2 = scmp.ge.s32.totalorder %s854_s24, 4   ;;  %s1010_s18 = smov %s783_s19 }
 0x2a8   : > { %s1011_s19 = smov %s787_s20  ;;  %s1012_s20 = smov %s865_s27 }
 0x2a9   : > { %s1013_s21 = smov %s854_s24  ;;  %17 = sbr.rel (!%p15_p2) target bundleno = 3 (0x3), region = 89 }
 0x2ae   :  { %589 = vsyncpa [#allocation4], 1 }
 0x2af   :  { %591 = vsyncpa [#allocation4 + $0x1], 1 }

</bundles_post_ra>
